<compile_context>
chip_gen: v7x
topology: tpu7x:2x2x1
jax: 0.10.0
libtpu: 0.0.40
codegen_flags: <defaults>
</compile_context>

<pallas_src>
import jax
import jax.numpy as jnp
from jax.experimental import pallas as pl
from jax.experimental.pallas import tpu as pltpu
from functools import partial


def _layernorm_kernel(x_ref, w_ref, b_ref, o_ref, *, eps, h_valid):
    # x_ref: (block_rows, H_pad); w_ref/b_ref: (1, H_pad) fp32.
    x = x_ref[...].astype(jnp.float32)
    h_pad = x.shape[-1]
    if h_valid == h_pad:
        # Fast path: no lane padding, plain row statistics.
        u = jnp.mean(x, axis=-1, keepdims=True)
        d = x - u
        s = jnp.mean(d * d, axis=-1, keepdims=True)
    else:
        # Lane-padded path: mask padded lanes out of mean/variance.
        lane = jax.lax.broadcasted_iota(jnp.int32, x.shape, dimension=x.ndim - 1)
        mask = lane < h_valid
        inv_h = jnp.float32(1.0 / h_valid)
        xm = jnp.where(mask, x, 0.0)
        u = jnp.sum(xm, axis=-1, keepdims=True) * inv_h
        d = jnp.where(mask, x - u, 0.0)
        s = jnp.sum(d * d, axis=-1, keepdims=True) * inv_h
    inv = jax.lax.rsqrt(s + eps)                     # eps inside the sqrt (TF style)
    y = d * inv
    o_ref[...] = (w_ref[...] * y + b_ref[...]).astype(o_ref.dtype)


def _vmem_limits():
    """Generation-aware (vmem_limit_bytes, pipeline_budget_bytes)."""
    try:
        cap = int(pltpu.get_tpu_info().vmem_capacity_bytes)
        if cap <= 0:
            raise ValueError
    except Exception:
        cap = 64 * 1024 * 1024          # conservative fallback (v7x-sized VMEM)
    limit = (cap * 3) // 4              # 128 MiB -> 96 MiB, 64 MiB -> 48 MiB
    budget = (limit * 3) // 4           # 96 -> 72 MiB,       48 -> 36 MiB
    return limit, budget


def _pick_block_rows(rows, h_pad, itemsize, vmem_budget_bytes,
                     *, target_step_bytes=8 * 1024 * 1024, max_block_rows=8192):
    """Row tile sized to an HBM-traffic target, capped by a VMEM budget that
    includes the fp32 compute working set, aligned to the packed sublane size."""
    itemsize = int(itemsize)
    sublane = max(8, 32 // itemsize)                      # fp32->8, bf16->16, int8/fp8->32
    # Double-buffered input + output tiles (input dtype) + ~3 fp32 temporaries
    # (x upcast, d, y) that live in VMEM/vregs during compute.
    per_row_bytes = 2 * 2 * h_pad * itemsize + 3 * h_pad * 4
    vmem_rows = max(vmem_budget_bytes // per_row_bytes, sublane)
    traffic_rows = max(target_step_bytes // max(2 * h_pad * itemsize, 1), sublane)
    rows_aligned = ((rows + sublane - 1) // sublane) * sublane
    br = min(int(traffic_rows), int(vmem_rows), int(max_block_rows), int(rows_aligned))
    br = max(sublane, (br // sublane) * sublane)
    return int(br)


def _candidate_semantics():
    """Prefer CORE_PARALLEL on chips with >=2 TensorCores (v7x); otherwise the
    plain 'parallel' annotation. Always include the safe fallback."""
    multi_tc = False
    try:
        info = pltpu.get_tpu_info()
        for attr in ("num_tensorcores", "tensorcore_count", "num_cores",
                     "cores_per_chip", "num_cores_per_chip"):
            n = getattr(info, attr, None)
            if n is not None and int(n) >= 2:
                multi_tc = True
                break
    except Exception:
        pass
    if not multi_tc:
        try:
            kind = jax.devices()[0].device_kind.lower()
            if "v7" in kind or "7x" in kind:
                multi_tc = True
        except Exception:
            pass
    if multi_tc:
        return [(pltpu.CORE_PARALLEL,), ("parallel",)]
    return [("parallel",)]


def layernorm(x, weight, bias, eps=1e-12, block_rows=None):
    """x: (..., H). weight, bias: (H,). Returns same shape/dtype as x."""
    orig_shape = x.shape
    H = orig_shape[-1]
    x2 = x.reshape(-1, H)
    rows = x2.shape[0]
    itemsize = jnp.dtype(x.dtype).itemsize

    # Keep the lane axis dense: pad H up to a multiple of 128 if needed.
    h_pad = ((H + 127) // 128) * 128
    if h_pad != H:
        x2 = jnp.pad(x2, ((0, 0), (0, h_pad - H)))
        w_full = jnp.pad(weight, (0, h_pad - H))
        b_full = jnp.pad(bias, (0, h_pad - H))
    else:
        w_full = weight
        b_full = bias

    vmem_limit_bytes, vmem_budget_bytes = _vmem_limits()
    if block_rows is None:
        block_rows = _pick_block_rows(rows, h_pad, itemsize, vmem_budget_bytes)

    # Pre-cast params to fp32 once in the wrapper (no per-step VPU casts).
    w2 = w_full.reshape(1, h_pad).astype(jnp.float32)
    b2 = b_full.reshape(1, h_pad).astype(jnp.float32)

    grid = (pl.cdiv(rows, block_rows),)

    cost = pl.CostEstimate(
        flops=7 * rows * H,
        transcendentals=rows,
        bytes_accessed=2 * rows * H * int(itemsize) + 2 * H * 4,
    )

    kernel = partial(_layernorm_kernel, eps=eps, h_valid=H)
    out_shape = jax.ShapeDtypeStruct((rows, h_pad), x.dtype)
    in_specs = [
        pl.BlockSpec((block_rows, h_pad), lambda i: (i, 0)),
        pl.BlockSpec((1, h_pad), lambda i: (0, 0)),
        pl.BlockSpec((1, h_pad), lambda i: (0, 0)),
    ]
    out_specs = pl.BlockSpec((block_rows, h_pad), lambda i: (i, 0))

    out = None
    last_err = None
    for dim_sem in _candidate_semantics():
        try:
            call = pl.pallas_call(
                kernel,
                out_shape=out_shape,
                grid_spec=pltpu.PrefetchScalarGridSpec(
                    num_scalar_prefetch=0,
                    grid=grid,
                    in_specs=in_specs,
                    out_specs=out_specs,
                ),
                compiler_params=pltpu.CompilerParams(
                    dimension_semantics=dim_sem,
                    vmem_limit_bytes=vmem_limit_bytes,
                ),
                cost_estimate=cost,
            )
            out = call(x2, w2, b2)
            break
        except Exception as e:  # fall back to the safe annotation if needed
            last_err = e
            out = None
    if out is None:
        raise last_err

    if h_pad != H:
        out = out[:, :H]
    return out.reshape(orig_shape)


if __name__ == "__main__":
    key = jax.random.PRNGKey(0)
    # Small shapes consistent with the module; H a multiple of 128 so the
    # fast (unmasked) lane-dense path is exercised.
    B, S, H = 2, 8, 256
    x = jax.random.normal(key, (B, S, H), dtype=jnp.float32)

    # nn.Parameter(torch.ones(hidden_size)) / torch.zeros(hidden_size)
    weight = jnp.ones((H,), dtype=jnp.float32)
    bias = jnp.zeros((H,), dtype=jnp.float32)

    out = layernorm(x, weight, bias, eps=1e-12)
    out = jax.block_until_ready(out)

    # Pure-JAX reference check (matches the PyTorch forward exactly).
    u = jnp.mean(x, axis=-1, keepdims=True)
    s = jnp.mean((x - u) ** 2, axis=-1, keepdims=True)
    ref = weight * ((x - u) / jnp.sqrt(s + 1e-12)) + bias
    assert jnp.allclose(out, ref, atol=1e-5, rtol=1e-5), "mismatch vs reference"

    print("KERNEL_OK")
</pallas_src>

<mosaic_0001>
module attributes {stable_mosaic.version = 11 : i64} {
  func.func @_layernorm_kernel(%arg0: i32, %arg1: memref<16x256xf32, #tpu.memory_space<vmem>>, %arg2: memref<1x256xf32, #tpu.memory_space<vmem>>, %arg3: memref<1x256xf32, #tpu.memory_space<vmem>>, %arg4: memref<16x256xf32, #tpu.memory_space<vmem>>) attributes {dimension_semantics = [#tpu.dimension_semantics<parallel>], iteration_bounds = array<i64: 1>, scalar_prefetch = 0 : i64, scratch_operands = 0 : i64, tpu.core_type = #tpu.core_type<tc>, window_params = [{transform_indices = @transform_0, window_bounds = array<i64: 16, 256>}, {pipeline_mode = #tpu.pipeline_mode<synchronous>, transform_indices = @transform_1, window_bounds = array<i64: 1, 256>}, {pipeline_mode = #tpu.pipeline_mode<synchronous>, transform_indices = @transform_2, window_bounds = array<i64: 1, 256>}, {transform_indices = @transform_3, window_bounds = array<i64: 16, 256>}]} {
    %c0 = arith.constant 0 : index
    %c0_0 = arith.constant 0 : index
    %0 = vector.load %arg1[%c0, %c0_0] : memref<16x256xf32, #tpu.memory_space<vmem>>, vector<16x256xf32>
    %cst = arith.constant dense<0.000000e+00> : vector<16xf32>
    %1 = vector.multi_reduction <add>, %0, %cst [1] : vector<16x256xf32> to vector<16xf32>
    %2 = vector.shape_cast %1 : vector<16xf32> to vector<16x1xf32>
    %cst_1 = arith.constant 2.560000e+02 : f32
    %3 = vector.broadcast %cst_1 : f32 to vector<16x1xf32>
    %4 = arith.divf %2, %3 : vector<16x1xf32>
    %5 = vector.broadcast %4 : vector<16x1xf32> to vector<16x256xf32>
    %6 = arith.subf %0, %5 : vector<16x256xf32>
    %7 = arith.mulf %6, %6 : vector<16x256xf32>
    %cst_2 = arith.constant dense<0.000000e+00> : vector<16xf32>
    %8 = vector.multi_reduction <add>, %7, %cst_2 [1] : vector<16x256xf32> to vector<16xf32>
    %9 = vector.shape_cast %8 : vector<16xf32> to vector<16x1xf32>
    %cst_3 = arith.constant 2.560000e+02 : f32
    %10 = vector.broadcast %cst_3 : f32 to vector<16x1xf32>
    %11 = arith.divf %9, %10 : vector<16x1xf32>
    %cst_4 = arith.constant 9.99999996E-13 : f32
    %12 = vector.broadcast %cst_4 : f32 to vector<16x1xf32>
    %13 = arith.addf %11, %12 : vector<16x1xf32>
    %14 = math.rsqrt %13 : vector<16x1xf32>
    %15 = vector.broadcast %14 : vector<16x1xf32> to vector<16x256xf32>
    %16 = arith.mulf %6, %15 : vector<16x256xf32>
    %c0_5 = arith.constant 0 : index
    %c0_6 = arith.constant 0 : index
    %17 = vector.load %arg2[%c0_5, %c0_6] : memref<1x256xf32, #tpu.memory_space<vmem>>, vector<1x256xf32>
    %18 = vector.broadcast %17 : vector<1x256xf32> to vector<16x256xf32>
    %19 = arith.mulf %18, %16 : vector<16x256xf32>
    %c0_7 = arith.constant 0 : index
    %c0_8 = arith.constant 0 : index
    %20 = vector.load %arg3[%c0_7, %c0_8] : memref<1x256xf32, #tpu.memory_space<vmem>>, vector<1x256xf32>
    %21 = vector.broadcast %20 : vector<1x256xf32> to vector<16x256xf32>
    %22 = arith.addf %19, %21 : vector<16x256xf32>
    %c0_9 = arith.constant 0 : index
    %c0_10 = arith.constant 0 : index
    %23 = vector.load %arg4[%c0_9, %c0_10] : memref<16x256xf32, #tpu.memory_space<vmem>>, vector<16x256xf32>
    tpu.vector_store %arg4[%c0_9, %c0_10], %22 {strides = array<i32>} : memref<16x256xf32, #tpu.memory_space<vmem>>, vector<16x256xf32>,
    return
  }
  func.func @transform_0(%arg0: i32) -> (i32, i32) {
    %c0_i32 = arith.constant 0 : i32
    %c0_i32_0 = arith.constant 0 : i32
    return %arg0, %c0_i32 : i32, i32
  }
  func.func @transform_1(%arg0: i32) -> (i32, i32) {
    %c0_i32 = arith.constant 0 : i32
    %c0_i32_0 = arith.constant 0 : i32
    %c0_i32_1 = arith.constant 0 : i32
    return %c0_i32, %c0_i32_0 : i32, i32
  }
  func.func @transform_2(%arg0: i32) -> (i32, i32) {
    %c0_i32 = arith.constant 0 : i32
    %c0_i32_0 = arith.constant 0 : i32
    %c0_i32_1 = arith.constant 0 : i32
    return %c0_i32, %c0_i32_0 : i32, i32
  }
  func.func @transform_3(%arg0: i32) -> (i32, i32) {
    %c0_i32 = arith.constant 0 : i32
    %c0_i32_0 = arith.constant 0 : i32
    return %arg0, %c0_i32 : i32, i32
  }
}

</mosaic_0001>

<bundles_post_ra>
// kernel: tpu_custom_call.1
= control target key start
LH: loop header
LB: loop body
LE: loop exit
PB: predicated region body
PF: predicated region fallthrough
CT: control target
= control target key end

     0   :  { %8 = vsyncpa [#allocation3], 0  ;;  %s235_s0 = inlined_call_operand.hbm [shape: f32[16,256], index: 0, kind: input, shape index: {}]   ;;  %s236_s1 = inlined_call_operand.vmem [shape: f32[1,256], index: 1, kind: input, shape index: {}]   ;;  %s237_s2 = inlined_call_operand.vmem [shape: f32[1,256], index: 2, kind: input, shape index: {}]   ;;  %s238_s3 = inlined_call_operand.hbm [shape: f32[16,256], index: 3, kind: output, shape index: {}]  }
   0x1   :  { %9 = vsyncpa [#allocation4], 0  ;;  %s175_s12 = smov [#allocation2]   ;;  %s127_s16 = scalar_lea.hbm %s235_s0, 512 }
   0x2   :  { %s15_s13 = sshll.u32 %s175_s12, 4  ;;  %p128_p0 = scmp.ne.s32.totalorder %s235_s0, %s127_s16  ;;  %s16_s13 = int_to_ptr.vmem [resolvable:$true] %s15_s13 }
   0x3   :  { %p131_p1 = scmp.lt.u32.totalorder %s127_s16, %s235_s0 }
   0x5   :  { %p133_p2 = pnand %p131_p1, %p128_p0 }
   0x7   :  { %136 = shalt.err (!%p133_p2)
}
   0x8   :  { %s137_s21 = scalar_lea.vmem %s16_s13, 512  ;;  %p142_p4 = scmp.lt.s32.totalorder %s16_s13, %s16_s13 }
   0x9   :  { %p138_p3 = scmp.ne.s32.totalorder %s16_s13, %s137_s21  ;;  %p143_p5 = scmp.lt.s32.totalorder %s137_s21, %s137_s21 }
   0xb   :  { %p144_p6 = por %p143_p5, %p142_p4 }
   0xd   :  { %p145_p7 = pnand %p144_p6, %p138_p3 }
   0xf   :  { %148 = shalt.err (!%p145_p7)
}
  0x10   :  { %s176_s22 = smov 256   ;;  %s177_s23 = smov 16  }
  0x11   :  { %21 = dma.hbm_to_vmem [thread:$0]  %s235_s0, 512, %s16_s13, [#allocation3], %s176_s22, %s176_s22, %s177_s23  }
  0x12   :  { %171 = dma.done.wait [#allocation3], 512  }
  0x13   :  { %172 = vsyncadd [#allocation3], 4294966784  ;;  %v29_v0 = vld [vmem:[#allocation2] sm:$0xff]  ;;  %v30_v1 = vld [vmem:[#allocation2 + $0x8] sm:$0xff]  ;;  %v68_v22 = vlaneseq  ;;  %s178_s29 = smov [#allocation5]  }
  0x14   :  { %v31_v2 = vld [vmem:[#allocation2 + $0x10] sm:$0xff]  ;;  %v33_v3 = vadd.f32 %v30_v1, %v29_v0  ;;  %v32_v4 = vld [vmem:[#allocation2 + $0x18] sm:$0xff]  ;;  %v66_v30 = vld [vmem:[%s236_s1] sm:$0x3]  ;;  %s107_s1 = sshll.u32 %s178_s29, 4  ;;  %s108_s1 = int_to_ptr.vmem [resolvable:$true] %s107_s1 }
  0x15   :  { %v36_v5 = vadd.f32 %v32_v4, %v31_v2  ;;  %v69_v26 = vshrl.u32 %v68_v22, 7  ;;  %v82_v31 = vld [vmem:[%s237_s2] sm:$0x3]  ;;  %s149_s2 = scalar_lea.vmem %s108_s1, 512  ;;  %p154_p9 = scmp.lt.s32.totalorder %s108_s1, %s108_s1 }
  0x16   :  { %34 = vadd.xlane.f32.xlu0 %v33_v3  ;;  %p150_p8 = scmp.ne.s32.totalorder %s108_s1, %s149_s2  ;;  %p155_p10 = scmp.lt.s32.totalorder %s149_s2, %s149_s2 }
  0x17   :  { %v70_v28 = vsub.s32 0, %v69_v26  ;;  %v74_v29 = vsub.s32 1, %v69_v26 }
  0x18   :  { %p156_p11 = por %p155_p10, %p154_p9 }
  0x19   :  { %v71_v32 = vrot.slane %v66_v30, %v70_v28  ;;  %v75_v33 = vrot.slane %v66_v30, %v74_v29  ;;  %v87_v37 = vrot.slane %v82_v31, %v70_v28  ;;  %v91_v38 = vrot.slane %v82_v31, %v74_v29 }
  0x1a   :  { %37 = vadd.xlane.f32.xlu0 %v36_v5  ;;  %p157_p12 = pnand %p156_p11, %p150_p8 }
  0xa3   :  { %v35_v6 = vpop.xlane.xlu0 %34 }
  0xa4   :  { %v40_v7 = vmul.f32 0.00390625, %v35_v6 }
  0xa6   :  { %v42_v8 = vsub.f32 %v29_v0, %v40_v7  ;;  %v43_v9 = vsub.f32 %v30_v1, %v40_v7 }
  0xa7   :  { %v38_v10 = vpop.xlane.xlu0 %37 }
  0xa8   :  { %v41_v11 = vmul.f32 0.00390625, %v38_v10  ;;  %v46_v12 = vmul.f32 %v42_v8, %v42_v8  ;;  %v47_v13 = vmul.f32 %v43_v9, %v43_v9 }
  0xaa   :  { %v44_v14 = vsub.f32 %v31_v2, %v41_v11  ;;  %v45_v15 = vsub.f32 %v32_v4, %v41_v11  ;;  %v50_v16 = vadd.f32 %v47_v13, %v46_v12 }
  0xac   :  { %51 = vadd.xlane.f32.xlu1 %v50_v16  ;;  %v48_v17 = vmul.f32 %v44_v14, %v44_v14  ;;  %v49_v18 = vmul.f32 %v45_v15, %v45_v15 }
  0xae   :  { %v53_v19 = vadd.f32 %v49_v18, %v48_v17 }
  0xb0   :  { %54 = vadd.xlane.f32.xlu1 %v53_v19 }
 0x139   :  { %v52_v20 = vpop.xlane.xlu1 %51 }
 0x13a   :  { %v56_v21 = vmul.f32 0.00390625, %v52_v20 }
 0x13c   :  { %v58_v23 = vadd.f32 1e-12, %v56_v21 }
 0x13d   :  { %v55_v24 = vpop.xlane.xlu1 %54 }
 0x13e   :  { %123 = vrsqrt.f32 %v58_v23  ;;  %v57_v25 = vmul.f32 0.00390625, %v55_v24 }
 0x140   :  { %v59_v27 = vadd.f32 1e-12, %v57_v25 }
 0x142   :  { %125 = vrsqrt.f32 %v59_v27 }
 0x148   :  { %v124_v34 = vpop.eup %123 }
 0x149   :  { %v62_v35 = vmul.f32 %v124_v34, %v42_v8  ;;  %v63_v36 = vmul.f32 %v124_v34, %v43_v9 }
 0x14b   :  { %v78_v39 = vmul.f32 %v71_v32, %v62_v35  ;;  %v79_v40 = vmul.f32 %v75_v33, %v63_v36 }
 0x14c   :  { %v126_v41 = vpop.eup %125 }
 0x14d   :  { %v64_v42 = vmul.f32 %v126_v41, %v44_v14  ;;  %v65_v43 = vmul.f32 %v126_v41, %v45_v15  ;;  %v94_v44 = vadd.f32 %v87_v37, %v78_v39  ;;  %v95_v45 = vadd.f32 %v91_v38, %v79_v40 }
 0x14f   :  { %v80_v46 = vmul.f32 %v71_v32, %v64_v42  ;;  %v81_v47 = vmul.f32 %v75_v33, %v65_v43  ;;  %98 = vst [vmem:[#allocation5] sm:$0xff] %v94_v44  ;;  %99 = vst [vmem:[#allocation5 + $0x8] sm:$0xff] %v95_v45 }
 0x151   :  { %v96_v48 = vadd.f32 %v87_v37, %v80_v46  ;;  %v97_v49 = vadd.f32 %v91_v38, %v81_v47 }
 0x153   :  { %100 = vst [vmem:[#allocation5 + $0x10] sm:$0xff] %v96_v48  ;;  %101 = vst [vmem:[#allocation5 + $0x18] sm:$0xff] %v97_v49 }
 0x154   :  { %160 = shalt.err (!%p157_p12)
}
 0x155   :  { %s161_s5 = scalar_lea.hbm %s238_s3, 512 }
 0x156   :  { %p162_p13 = scmp.ne.s32.totalorder %s238_s3, %s161_s5  ;;  %p165_p0 = scmp.lt.u32.totalorder %s161_s5, %s238_s3 }
 0x158   :  { %p167_p1 = pnand %p165_p0, %p162_p13 }
 0x15a   :  { %170 = shalt.err (!%p167_p1)
}
 0x15b   :  { %113 = dma.vmem_to_hbm [thread:$0]  %s108_s1, 512, %s238_s3, [#allocation4], %s176_s22, %s176_s22, %s177_s23  }
 0x15c   :  { %173 = dma.done.wait [#allocation4], 512  }
 0x15d   :  { %174 = vsyncadd [#allocation4], 4294966784 }
 0x15e   :  { %117 = vsyncpa [#allocation3], 1 }
 0x15f   :  { %118 = vsyncpa [#allocation4], 1 }

</bundles_post_ra>
